<compile_context>
chip_gen: v7x
topology: tpu7x:2x2x1
jax: 0.10.0
libtpu: 0.0.40
codegen_flags: <defaults>
</compile_context>

<pallas_src>
import jax
import jax.numpy as jnp
from jax.experimental import pallas as pl
from jax.experimental.pallas import tpu as pltpu

HIDDEN = 64
_VMEM_BUDGET = 24 * 1024 * 1024  # bytes the batch tile (x + intermediates) may use


def _round_up(n, m):
    return ((n + m - 1) // m) * m


def value_kernel(x_ref, w1_ref, b1_ref, w2_ref, b2_ref, w3_ref, b3_ref, o_ref):
    # affine1 + tanh: bf16 MXU matmul, f32 accumulation, f32 tanh (EUP).
    x = x_ref[...].astype(jnp.bfloat16)
    h1 = jnp.tanh(
        jnp.dot(x, w1_ref[...], preferred_element_type=jnp.float32) + b1_ref[...]
    )
    # affine2 + tanh.
    h2 = jnp.tanh(
        jnp.dot(h1.astype(jnp.bfloat16), w2_ref[...],
                preferred_element_type=jnp.float32)
        + b2_ref[...]
    )
    # value head as a transposed matmul: (1,64) x (tb,64)^T -> (1, tb).
    # Output block is a single lane-dense row, avoiding tb/8 masked vst.msk
    # stores that a (tb, 1) column layout would cost.
    v = jnp.einsum("ok,nk->on", w3_ref[...], h2,
                   preferred_element_type=jnp.float32)
    o_ref[...] = (v + b3_ref[0, 0]).astype(o_ref.dtype)


def _pick_tile(batch, num_inputs, tb):
    # Rough per-row VMEM bytes: double-buffered f32 x tile + f32 intermediates.
    per_row_bytes = (2 * num_inputs + 4 * HIDDEN) * 4
    cap = max(256, (_VMEM_BUDGET // per_row_bytes) // 256 * 256)
    tb = _round_up(max(tb, 256), 256)          # MXU-row aligned (256 on v6e/v7x)
    tb = min(tb, cap, _round_up(batch, 256))   # never larger than needed
    return tb


def value_forward(x, params, *, tb=8192):
    """x: (B, num_inputs) f32 -> (B, 1) f32 state values."""
    w1, b1, w2, b2, w3, b3 = params
    B, num_inputs = x.shape

    # bf16 copies of the MXU weight operands (tiny, VMEM-resident across grid).
    w1_bf = w1.astype(jnp.bfloat16)
    w2_bf = w2.astype(jnp.bfloat16)
    w3_row = w3.reshape(1, HIDDEN).astype(jnp.float32)   # value head stays f32
    b3_s = b3.reshape(1, 1).astype(jnp.float32)          # SMEM scalar

    tb = _pick_tile(B, num_inputs, tb)
    n_tiles = pl.cdiv(B, tb)        # ragged final block handled by Pallas
    b_pad = n_tiles * tb

    resident = lambda a: pl.BlockSpec(a.shape, lambda i: (0,) * a.ndim)

    cost = pl.CostEstimate(
        flops=2 * B * (num_inputs * HIDDEN + HIDDEN * HIDDEN + HIDDEN),
        transcendentals=2 * B * HIDDEN,
        bytes_accessed=B * (num_inputs + 1) * 4
        + 2 * (num_inputs * HIDDEN + HIDDEN * HIDDEN + HIDDEN),
    )

    out = pl.pallas_call(
        value_kernel,
        out_shape=jax.ShapeDtypeStruct((1, b_pad), jnp.float32),
        grid=(n_tiles,),
        in_specs=[
            pl.BlockSpec((tb, num_inputs), lambda i: (i, 0)),   # x: batch-tiled
            resident(w1_bf), resident(b1),                      # VMEM-resident
            resident(w2_bf), resident(b2),
            resident(w3_row),
            pl.BlockSpec(memory_space=pltpu.MemorySpace.SMEM),  # b3 scalar
        ],
        out_specs=pl.BlockSpec((1, tb), lambda i: (0, i)),
        compiler_params=pltpu.CompilerParams(
            # TODO(synk): try pltpu.CORE_PARALLEL here on v7x (2 TCs/chip).
            dimension_semantics=("parallel",),
            vmem_limit_bytes=48 * 1024 * 1024,
        ),
        cost_estimate=cost,
    )(x, w1_bf, b1, w2_bf, b2, w3_row, b3_s)

    # (1, b_pad) -> (b_pad, 1) is a free row-major reshape; drop padded rows.
    return out.reshape(b_pad, 1)[:B]


def init_params(key, num_inputs):
    """Deterministic init mimicking PyTorch nn.Linear defaults
    (uniform(-1/sqrt(fan_in), 1/sqrt(fan_in))), plus value_head weight *= 0.1
    and bias *= 0.0 from Value.__init__."""
    k1, k2, k3, k4, k5, k6 = jax.random.split(key, 6)

    def linear_init(kw, kb, fan_in, fan_out):
        bound = 1.0 / jnp.sqrt(jnp.float32(fan_in))
        w = jax.random.uniform(kw, (fan_in, fan_out), jnp.float32, -bound, bound)
        b = jax.random.uniform(kb, (1, fan_out), jnp.float32, -bound, bound)
        return w, b

    w1, b1 = linear_init(k1, k2, num_inputs, HIDDEN)
    w2, b2 = linear_init(k3, k4, HIDDEN, HIDDEN)
    w3, b3 = linear_init(k5, k6, HIDDEN, 1)
    w3 = w3 * 0.1          # value_head.weight.data.mul_(0.1)
    b3 = b3 * 0.0          # value_head.bias.data.mul_(0.0)
    return (w1, b1, w2, b2, w3, b3)


def value_reference(x, params):
    """Pure-JAX f32 reference for correctness checking."""
    w1, b1, w2, b2, w3, b3 = params
    h1 = jnp.tanh(x @ w1 + b1)
    h2 = jnp.tanh(h1 @ w2 + b2)
    return h2 @ w3 + b3


if __name__ == "__main__":
    key = jax.random.PRNGKey(0)
    k_param, k_x1, k_x2 = jax.random.split(key, 3)

    num_inputs = 32
    params = init_params(k_param, num_inputs)

    # Small batch: single (ragged) tile, default tb clamps to 256.
    x_small = jax.random.normal(k_x1, (8, num_inputs), jnp.float32)
    out_small = jax.block_until_ready(value_forward(x_small, params))
    ref_small = value_reference(x_small, params)
    assert out_small.shape == (8, 1), out_small.shape
    assert jnp.allclose(out_small, ref_small, atol=1e-2, rtol=1e-2), (
        f"max abs err {jnp.max(jnp.abs(out_small - ref_small))}"
    )

    # Multi-tile path: 300 rows with tb=256 -> 2 grid steps, ragged final block
    # (no host-side padding of x).
    x_big = jax.random.normal(k_x2, (300, num_inputs), jnp.float32)
    out_big = jax.block_until_ready(value_forward(x_big, params, tb=256))
    ref_big = value_reference(x_big, params)
    assert out_big.shape == (300, 1), out_big.shape
    assert jnp.allclose(out_big, ref_big, atol=1e-2, rtol=1e-2), (
        f"max abs err {jnp.max(jnp.abs(out_big - ref_big))}"
    )

    print("KERNEL_OK")
</pallas_src>

<mosaic_0001>
module attributes {stable_mosaic.version = 11 : i64} {
  func.func @value_kernel(%arg0: i32, %arg1: memref<256x32xf32, #tpu.memory_space<vmem>>, %arg2: memref<32x64xbf16, #tpu.memory_space<vmem>>, %arg3: memref<1x64xf32, #tpu.memory_space<vmem>>, %arg4: memref<64x64xbf16, #tpu.memory_space<vmem>>, %arg5: memref<1x64xf32, #tpu.memory_space<vmem>>, %arg6: memref<1x64xf32, #tpu.memory_space<vmem>>, %arg7: memref<1x1xf32, #tpu.memory_space<smem>>, %arg8: memref<1x256xf32, #tpu.memory_space<vmem>>) attributes {dimension_semantics = [#tpu.dimension_semantics<parallel>], iteration_bounds = array<i64: 1>, scalar_prefetch = 0 : i64, scratch_operands = 0 : i64, tpu.core_type = #tpu.core_type<tc>, window_params = [{transform_indices = @transform_0, window_bounds = array<i64: 256, 32>}, {pipeline_mode = #tpu.pipeline_mode<synchronous>, transform_indices = @transform_1, window_bounds = array<i64: 32, 64>}, {pipeline_mode = #tpu.pipeline_mode<synchronous>, transform_indices = @transform_2, window_bounds = array<i64: 1, 64>}, {pipeline_mode = #tpu.pipeline_mode<synchronous>, transform_indices = @transform_3, window_bounds = array<i64: 64, 64>}, {pipeline_mode = #tpu.pipeline_mode<synchronous>, transform_indices = @transform_4, window_bounds = array<i64: 1, 64>}, {pipeline_mode = #tpu.pipeline_mode<synchronous>, transform_indices = @transform_5, window_bounds = array<i64: 1, 64>}, {transform_indices = @transform_6, window_bounds = array<i64: 1, 1>}, {transform_indices = @transform_7, window_bounds = array<i64: 1, 256>}]} {
    %c0 = arith.constant 0 : index
    %c0_0 = arith.constant 0 : index
    %0 = vector.load %arg1[%c0, %c0_0] : memref<256x32xf32, #tpu.memory_space<vmem>>, vector<256x32xf32>
    %1 = arith.truncf %0 : vector<256x32xf32> to vector<256x32xbf16>
    %c0_1 = arith.constant 0 : index
    %c0_2 = arith.constant 0 : index
    %2 = vector.load %arg2[%c0_1, %c0_2] : memref<32x64xbf16, #tpu.memory_space<vmem>>, vector<32x64xbf16>
    %cst = arith.constant dense<0.000000e+00> : vector<256x64xf32>
    %3 = tpu.matmul %1, %2, %cst {dimension_numbers = #tpu.dot_dimension_numbers<[1], [0], [0], [1], [0, 0, 1, 1], [], []>} : vector<256x32xbf16>, vector<32x64xbf16>, vector<256x64xf32> -> vector<256x64xf32>
    %c0_3 = arith.constant 0 : index
    %c0_4 = arith.constant 0 : index
    %4 = vector.load %arg3[%c0_3, %c0_4] : memref<1x64xf32, #tpu.memory_space<vmem>>, vector<1x64xf32>
    %5 = vector.broadcast %4 : vector<1x64xf32> to vector<256x64xf32>
    %6 = arith.addf %3, %5 : vector<256x64xf32>
    %7 = math.tanh %6 : vector<256x64xf32>
    %8 = arith.truncf %7 : vector<256x64xf32> to vector<256x64xbf16>
    %c0_5 = arith.constant 0 : index
    %c0_6 = arith.constant 0 : index
    %9 = vector.load %arg4[%c0_5, %c0_6] : memref<64x64xbf16, #tpu.memory_space<vmem>>, vector<64x64xbf16>
    %cst_7 = arith.constant dense<0.000000e+00> : vector<256x64xf32>
    %10 = tpu.matmul %8, %9, %cst_7 {dimension_numbers = #tpu.dot_dimension_numbers<[1], [0], [0], [1], [0, 0, 1, 1], [], []>} : vector<256x64xbf16>, vector<64x64xbf16>, vector<256x64xf32> -> vector<256x64xf32>
    %c0_8 = arith.constant 0 : index
    %c0_9 = arith.constant 0 : index
    %11 = vector.load %arg5[%c0_8, %c0_9] : memref<1x64xf32, #tpu.memory_space<vmem>>, vector<1x64xf32>
    %12 = vector.broadcast %11 : vector<1x64xf32> to vector<256x64xf32>
    %13 = arith.addf %10, %12 : vector<256x64xf32>
    %14 = math.tanh %13 : vector<256x64xf32>
    %c0_10 = arith.constant 0 : index
    %c0_11 = arith.constant 0 : index
    %15 = vector.load %arg6[%c0_10, %c0_11] : memref<1x64xf32, #tpu.memory_space<vmem>>, vector<1x64xf32>
    "tpu.trace_start"() <{level = 10 : i32, message = "ok,nk->on"}> : () -> ()
    %cst_12 = arith.constant dense<0.000000e+00> : vector<1x256xf32>
    %16 = tpu.matmul %15, %14, %cst_12 {dimension_numbers = #tpu.dot_dimension_numbers<[1], [1], [0], [0], [0, 0, 1, 0], [], []>} : vector<1x64xf32>, vector<256x64xf32>, vector<1x256xf32> -> vector<1x256xf32>
    "tpu.trace_stop"() : () -> ()
    %c0_13 = arith.constant 0 : index
    %c0_14 = arith.constant 0 : index
    %17 = memref.load %arg7[%c0_13, %c0_14] : memref<1x1xf32, #tpu.memory_space<smem>>
    %18 = vector.broadcast %17 : f32 to vector<1x256xf32>
    %19 = arith.addf %16, %18 : vector<1x256xf32>
    %c0_15 = arith.constant 0 : index
    %c0_16 = arith.constant 0 : index
    %20 = vector.load %arg8[%c0_15, %c0_16] : memref<1x256xf32, #tpu.memory_space<vmem>>, vector<1x256xf32>
    tpu.vector_store %arg8[%c0_15, %c0_16], %19 {strides = array<i32>} : memref<1x256xf32, #tpu.memory_space<vmem>>, vector<1x256xf32>,
    return
  }
  func.func @transform_0(%arg0: i32) -> (i32, i32) {
    %c0_i32 = arith.constant 0 : i32
    %c0_i32_0 = arith.constant 0 : i32
    return %arg0, %c0_i32 : i32, i32
  }
  func.func @transform_1(%arg0: i32) -> (i32, i32) {
    %c0_i32 = arith.constant 0 : i32
    %c0_i32_0 = arith.constant 0 : i32
    %c0_i32_1 = arith.constant 0 : i32
    return %c0_i32, %c0_i32_0 : i32, i32
  }
  func.func @transform_2(%arg0: i32) -> (i32, i32) {
    %c0_i32 = arith.constant 0 : i32
    %c0_i32_0 = arith.constant 0 : i32
    %c0_i32_1 = arith.constant 0 : i32
    return %c0_i32, %c0_i32_0 : i32, i32
  }
  func.func @transform_3(%arg0: i32) -> (i32, i32) {
    %c0_i32 = arith.constant 0 : i32
    %c0_i32_0 = arith.constant 0 : i32
    %c0_i32_1 = arith.constant 0 : i32
    return %c0_i32, %c0_i32_0 : i32, i32
  }
  func.func @transform_4(%arg0: i32) -> (i32, i32) {
    %c0_i32 = arith.constant 0 : i32
    %c0_i32_0 = arith.constant 0 : i32
    %c0_i32_1 = arith.constant 0 : i32
    return %c0_i32, %c0_i32_0 : i32, i32
  }
  func.func @transform_5(%arg0: i32) -> (i32, i32) {
    %c0_i32 = arith.constant 0 : i32
    %c0_i32_0 = arith.constant 0 : i32
    %c0_i32_1 = arith.constant 0 : i32
    return %c0_i32, %c0_i32_0 : i32, i32
  }
  func.func @transform_6(%arg0: i32) -> (i32, i32) {
    %c0_i32 = arith.constant 0 : i32
    %c0_i32_0 = arith.constant 0 : i32
    %c0_i32_1 = arith.constant 0 : i32
    return %c0_i32, %c0_i32_0 : i32, i32
  }
  func.func @transform_7(%arg0: i32) -> (i32, i32) {
    %c0_i32 = arith.constant 0 : i32
    %c0_i32_0 = arith.constant 0 : i32
    return %c0_i32, %arg0 : i32, i32
  }
}

</mosaic_0001>

<bundles_post_ra>
// kernel: tpu_custom_call.1
= control target key start
LH: loop header
LB: loop body
LE: loop exit
PB: predicated region body
PF: predicated region fallthrough
CT: control target
= control target key end

     0   :  { %13 = vsyncpa [#allocation4], 0  ;;  %s1729_s0 = inlined_call_operand.hbm [shape: f32[8,32], index: 0, kind: input, shape index: {}]   ;;  %s1730_s1 = inlined_call_operand.hbm [shape: bf16[32,64], index: 1, kind: input, shape index: {}]   ;;  %s1731_s2 = inlined_call_operand.vmem [shape: f32[1,64], index: 2, kind: input, shape index: {}]   ;;  %s1732_s3 = inlined_call_operand.hbm [shape: bf16[64,64], index: 3, kind: input, shape index: {}]   ;;  %s1733_s4 = inlined_call_operand.vmem [shape: f32[1,64], index: 4, kind: input, shape index: {}]   ;;  %s1734_s5 = inlined_call_operand.vmem [shape: f32[1,64], index: 5, kind: input, shape index: {}]   ;;  %s1735_s6 = inlined_call_operand.<no memory space> [shape: f32[1,1], index: 6, kind: input, shape index: {}]   ;;  %s1736_s7 = inlined_call_operand.hbm [shape: f32[1,256], index: 7, kind: output, shape index: {}]  }
   0x1   :  { %14 = vsyncpa [#allocation7], 0 }
   0x2   :  { %15 = vsyncpa [#allocation5], 0 }
   0x3   :  { %20 = vsyncadd [#allocation4], 3968  ;;  %s1398_s24 = smov [#allocation6]   ;;  %s1304_s28 = scalar_lea.hbm %s1730_s1, 256 }
   0x4   :  { %s33_s25 = sshll.u32 %s1398_s24, 4  ;;  %p1305_p0 = scmp.ne.s32.totalorder %s1730_s1, %s1304_s28  ;;  %s34_s25 = int_to_ptr.vmem [resolvable:$true] %s33_s25 }
   0x5   :  { %p1308_p1 = scmp.lt.u32.totalorder %s1304_s28, %s1730_s1 }
   0x7   :  { %p1310_p2 = pnand %p1308_p1, %p1305_p0 }
   0x9   :  { %1313 = shalt.err (!%p1310_p2)
}
   0xa   :  { %s1314_s10 = scalar_lea.vmem %s34_s25, 256  ;;  %p1319_p4 = scmp.lt.s32.totalorder %s34_s25, %s34_s25 }
   0xb   :  { %p1315_p3 = scmp.ne.s32.totalorder %s34_s25, %s1314_s10  ;;  %p1320_p5 = scmp.lt.s32.totalorder %s1314_s10, %s1314_s10 }
   0xd   :  { %p1321_p6 = por %p1320_p5, %p1319_p4 }
   0xf   :  { %p1322_p7 = pnand %p1321_p6, %p1315_p3 }
  0x11   :  { %1325 = shalt.err (!%p1322_p7)
}
  0x12   :  { %s1399_s11 = smov 64   ;;  %s1400_s12 = smov 4  }
  0x13   :  { %39 = dma.hbm_to_vmem [thread:$0]  %s1730_s1, 256, %s34_s25, [#allocation7], %s1399_s11, %s1399_s11, %s1400_s12  }
  0x14   :  { %s1401_s15 = smov [#allocation3]   ;;  %s1326_s19 = scalar_lea.hbm %s1729_s0, 128 }
  0x15   :  { %s21_s16 = sshll.u32 %s1401_s15, 4  ;;  %p1327_p8 = scmp.ne.s32.totalorder %s1729_s0, %s1326_s19  ;;  %s22_s16 = int_to_ptr.vmem [resolvable:$true] %s21_s16 }
  0x16   :  { %p1330_p9 = scmp.lt.u32.totalorder %s1326_s19, %s1729_s0 }
  0x18   :  { %p1332_p10 = pnand %p1330_p9, %p1327_p8 }
  0x1a   :  { %1335 = shalt.err (!%p1332_p10)
}
  0x1b   :  { %s1336_s24 = scalar_lea.vmem %s22_s16, 128  ;;  %s1340_s1 = scalar_lea.vmem %s22_s16, 4096 }
  0x1c   :  { %p1337_p11 = scmp.ne.s32.totalorder %s22_s16, %s1336_s24  ;;  %p1341_p12 = scmp.lt.s32.totalorder %s22_s16, %s22_s16 }
  0x1d   :  { %p1342_p13 = scmp.lt.s32.totalorder %s1340_s1, %s1336_s24 }
  0x1f   :  { %p1343_p0 = por %p1342_p13, %p1341_p12 }
  0x21   :  { %p1344_p1 = pnand %p1343_p0, %p1337_p11 }
  0x23   :  { %1347 = shalt.err (!%p1344_p1)
}
  0x24   :  { %s1402_s25 = smov 128   ;;  %s1403_s26 = smov 8  }
  0x25   :  { %27 = dma.hbm_to_vmem [thread:$0]  %s1729_s0, 128, %s22_s16, [#allocation4], %s1402_s25, %s1402_s25, %s1403_s26  }
  0x26   :  { %s1404_s29 = smov [#allocation8]   ;;  %s1348_s10 = scalar_lea.hbm %s1732_s3, 512 }
  0x27   :  { %s47_s30 = sshll.u32 %s1404_s29, 4  ;;  %p1349_p2 = scmp.ne.s32.totalorder %s1732_s3, %s1348_s10  ;;  %s48_s30 = int_to_ptr.vmem [resolvable:$true] %s47_s30 }
  0x28   :  { %p1352_p3 = scmp.lt.u32.totalorder %s1348_s10, %s1732_s3 }
  0x2a   :  { %p1354_p4 = pnand %p1352_p3, %p1349_p2 }
  0x2c   :  { %1357 = shalt.err (!%p1354_p4)
}
  0x2d   :  { %s1358_s18 = scalar_lea.vmem %s48_s30, 512  ;;  %p1363_p6 = scmp.lt.s32.totalorder %s48_s30, %s48_s30 }
  0x2e   :  { %p1359_p5 = scmp.ne.s32.totalorder %s48_s30, %s1358_s18  ;;  %p1364_p7 = scmp.lt.s32.totalorder %s1358_s18, %s1358_s18 }
  0x30   :  { %p1365_p8 = por %p1364_p7, %p1363_p6 }
  0x32   :  { %p1366_p9 = pnand %p1365_p8, %p1359_p5 }
  0x34   :  { %1369 = shalt.err (!%p1366_p9)
}
  0x35   :  { %53 = dma.hbm_to_vmem [thread:$0]  %s1732_s3, 512, %s48_s30, [#allocation7], %s1399_s11, %s1399_s11, %s1400_s12  }
  0x36   :  { %1392 = dma.done.wait [#allocation4], 4096  }
  0x37   :  { %1393 = vsyncadd [#allocation4], 4294963200 }
  0x38   :  { %1394 = dma.done.wait [#allocation7], 768  }
  0x39   :  { %1395 = vsyncadd [#allocation7], 4294966528  ;;  %v1170_v0 = vld [vmem:[#allocation6] sm:$0xff]   ;;  %v1171_v1 = vld [vmem:[#allocation6 + $0x8] sm:$0xff]   ;;  %vm141_vm0 = vcmask 261120   ;;  %vm438_vm1 = vcmask 523264  }
  0x3a   :  { %1037 = vmatprep.subr.bf16.mxu0 %v1170_v0  ;;  %v70_v2 = vld [vmem:[#allocation3] sm:$0xff]  ;;  %v71_v3 = vld [vmem:[#allocation3 + $0x8] sm:$0xff]  ;;  %v72_v5 = vld [vmem:[#allocation3 + $0x10] sm:$0xff]  ;;  %s1406_s21 = smov [#allocation9]  }
  0x3b   :  { %1038 = vmatpush3.bf16.msra.mxu0 %v1170_v0  ;;  %v102_v4 = vpack.c.bf16 %v71_v3, %v70_v2  ;;  %v73_v6 = vld [vmem:[#allocation3 + $0x18] sm:$0xff]  ;;  %v74_v7 = vld [vmem:[#allocation3 + $0x20] sm:$0xff]  ;;  %v75_v8 = vld [vmem:[#allocation3 + $0x28] sm:$0xff]  ;;  %s882_s22 = sshll.u32 %s1406_s21, 4  ;;  %s883_s22 = int_to_ptr.vmem [resolvable:$true] %s882_s22 }
  0x3c   :  { %1039 = vmatprep.subr.bf16.mxu0 %v1171_v1  ;;  %v103_v9 = vpack.c.bf16 %v73_v6, %v72_v5  ;;  %v104_v10 = vpack.c.bf16 %v75_v8, %v74_v7  ;;  %v76_v11 = vld [vmem:[#allocation3 + $0x30] sm:$0xff]  ;;  %v77_v12 = vld [vmem:[#allocation3 + $0x38] sm:$0xff]  ;;  %v78_v13 = vld [vmem:[#allocation3 + $0x40] sm:$0xff]  ;;  %s1370_s23 = scalar_lea.vmem %s883_s22, 32  ;;  %p1375_p11 = scmp.lt.s32.totalorder %s883_s22, %s883_s22 }
  0x3d   :  { %1041 = vmatprep.mubr.msk.bf16.mxu0 %vm141_vm0, %v102_v4  ;;  %v79_v14 = vld [vmem:[#allocation3 + $0x48] sm:$0xff]  ;;  %v105_v15 = vpack.c.bf16 %v77_v12, %v76_v11  ;;  %v80_v17 = vld [vmem:[#allocation3 + $0x50] sm:$0xff]  ;;  %v81_v18 = vld [vmem:[#allocation3 + $0x58] sm:$0xff]  ;;  %p1371_p10 = scmp.ne.s32.totalorder %s883_s22, %s1370_s23  ;;  %p1376_p12 = scmp.lt.s32.totalorder %s1370_s23, %s1370_s23 }
  0x3e   :  { %v106_v16 = vpack.c.bf16 %v79_v14, %v78_v13  ;;  %v82_v19 = vld [vmem:[#allocation3 + $0x60] sm:$0xff]  ;;  %v83_v20 = vld [vmem:[#allocation3 + $0x68] sm:$0xff]  ;;  %v107_v21 = vpack.c.bf16 %v81_v18, %v80_v17  ;;  %v84_v23 = vld [vmem:[#allocation3 + $0x70] sm:$0xff] }
  0x3f   :  { %1040 = vmatpush3.bf16.msra.mxu0 %v1171_v1  ;;  %v108_v22 = vpack.c.bf16 %v83_v20, %v82_v19  ;;  %v85_v24 = vld [vmem:[#allocation3 + $0x78] sm:$0xff]  ;;  %v86_v25 = vld [vmem:[#allocation3 + $0x80] sm:$0xff]  ;;  %v87_v26 = vld [vmem:[#allocation3 + $0x88] sm:$0xff]  ;;  %p1377_p13 = por %p1376_p12, %p1375_p11 }
  0x40   :  { %v109_v27 = vpack.c.bf16 %v85_v24, %v84_v23  ;;  %v110_v28 = vpack.c.bf16 %v87_v26, %v86_v25  ;;  %v88_v29 = vld [vmem:[#allocation3 + $0x90] sm:$0xff]  ;;  %v89_v30 = vld [vmem:[#allocation3 + $0x98] sm:$0xff]  ;;  %v90_v31 = vld [vmem:[#allocation3 + $0xa0] sm:$0xff] }
  0x41   :  { %v91_v32 = vld [vmem:[#allocation3 + $0xa8] sm:$0xff]  ;;  %v111_v33 = vpack.c.bf16 %v89_v30, %v88_v29  ;;  %v92_v35 = vld [vmem:[#allocation3 + $0xb0] sm:$0xff]  ;;  %v93_v36 = vld [vmem:[#allocation3 + $0xb8] sm:$0xff]  ;;  %p1378_p0 = pnand %p1377_p13, %p1371_p10 }
  0x42   :  { %1042 = vmatmul.mubr.msk.bf16.vlgmr.msra.gmra.mrb[0].mxu0 %vm141_vm0, %v103_v9  ;;  %v112_v34 = vpack.c.bf16 %v91_v32, %v90_v31  ;;  %v94_v37 = vld [vmem:[#allocation3 + $0xc0] sm:$0xff]  ;;  %v95_v38 = vld [vmem:[#allocation3 + $0xc8] sm:$0xff]  ;;  %v113_v39 = vpack.c.bf16 %v93_v36, %v92_v35  ;;  %v96_v41 = vld [vmem:[#allocation3 + $0xd0] sm:$0xff] }
  0x43   :  { %1045 = vmatprep.mubr.msk.bf16.mxu0 %vm141_vm0, %v104_v10  ;;  %v114_v40 = vpack.c.bf16 %v95_v38, %v94_v37  ;;  %v97_v42 = vld [vmem:[#allocation3 + $0xd8] sm:$0xff]  ;;  %v98_v43 = vld [vmem:[#allocation3 + $0xe0] sm:$0xff]  ;;  %v99_v44 = vld [vmem:[#allocation3 + $0xe8] sm:$0xff] }
  0x44   :  { %v115_v45 = vpack.c.bf16 %v97_v42, %v96_v41  ;;  %v116_v46 = vpack.c.bf16 %v99_v44, %v98_v43  ;;  %v100_v47 = vld [vmem:[#allocation3 + $0xf0] sm:$0xff]  ;;  %v101_v48 = vld [vmem:[#allocation3 + $0xf8] sm:$0xff]  ;;  %v1174_v52 = vld [vmem:[#allocation8 + $0x10] sm:$0xff]  }
  0x45   :  { %v117_v49 = vpack.c.bf16 %v101_v48, %v100_v47  ;;  %v1172_v50 = vld [vmem:[#allocation8] sm:$0xff]   ;;  %v1173_v51 = vld [vmem:[#allocation8 + $0x8] sm:$0xff]   ;;  %v1175_v53 = vld [vmem:[#allocation8 + $0x18] sm:$0xff]  }
  0x46   :  { %1073 = vmatprep.subr.bf16.mxu1 %v1172_v50  ;;  %v1508_v54 = vld [vmem:[%s1731_s2] ss:$0 sm:$0xff]  ;;  %vm1644_vm2 = vmpackc.low %vm438_vm1, %vm438_vm1 }
  0x47   :  { %1074 = vmatpush3.bf16.msra.mxu1 %v1172_v50 }
  0x48   :  { %1075 = vmatprep.subr.bf16.mxu1 %v1173_v51 }
  0x4a   :  { %1046 = vmatmul.mubr.msk.bf16.gmra.mrb[4].mxu0 %vm141_vm0, %v105_v15 }
  0x4b   :  { %1049 = vmatprep.mubr.msk.bf16.mxu0 %vm141_vm0, %v106_v16  ;;  %1076 = vmatpush3.bf16.msra.mxu1 %v1173_v51 }
  0x4c   :  { %1077 = vmatprep.subr.bf16.mxu1 %v1174_v52 }
  0x4f   :  { %1078 = vmatpush3.bf16.msra.mxu1 %v1174_v52 }
  0x50   :  { %1079 = vmatprep.subr.bf16.mxu1 %v1175_v53 }
  0x52   :  { %1050 = vmatmul.mubr.msk.bf16.gmra.mrb[8].mxu0 %vm141_vm0, %v107_v21 }
  0x53   :  { %1053 = vmatprep.mubr.msk.bf16.mxu0 %vm141_vm0, %v108_v22  ;;  %1080 = vmatpush3.bf16.msra.mxu1 %v1175_v53 }
  0x5a   :  { %1054 = vmatmul.mubr.msk.bf16.gmra.mrb[12].mxu0 %vm141_vm0, %v109_v27 }
  0x5b   :  { %1057 = vmatprep.mubr.msk.bf16.mxu0 %vm141_vm0, %v110_v28 }
  0x62   :  { %1058 = vmatmul.mubr.msk.bf16.gmra.mrb[16].mxu0 %vm141_vm0, %v111_v33 }
  0x63   :  { %1061 = vmatprep.mubr.msk.bf16.mxu0 %vm141_vm0, %v112_v34 }
  0x6a   :  { %1062 = vmatmul.mubr.msk.bf16.gmra.mrb[20].mxu0 %vm141_vm0, %v113_v39 }
  0x6b   :  { %1065 = vmatprep.mubr.msk.bf16.mxu0 %vm141_vm0, %v114_v40 }
  0x72   :  { %1066 = vmatmul.mubr.msk.bf16.gmra.mrb[24].mxu0 %vm141_vm0, %v115_v45 }
  0x73   :  { %1069 = vmatprep.mubr.msk.bf16.mxu0 %vm141_vm0, %v116_v46 }
  0x7a   :  { %1070 = vmatmul.mubr.msk.bf16.gmra.mrb[28].mxu0 %vm141_vm0, %v117_v49 }
 0x115   :  { %v1043_v55 = vpop.f32.mrb[0].mxu0 }
 0x116   :  { %v233_v56 = vadd.f32 %v1043_v55, %v1508_v54  ;;  %v224_v57 = vpop.f32.mrb[1].mxu0 }
 0x117   :  { %v225_v58 = vadd.f32 %v1508_v54, %v224_v57  ;;  %v1044_v59 = vpop.f32.mrb[2].mxu0 }
 0x118   :  { %1176 = vtanh.f32 %v233_v56  ;;  %v236_v60 = vadd.f32 %v1044_v59, %v1508_v54  ;;  %v227_v61 = vpop.f32.mrb[3].mxu0 }
 0x119   :  { %1178 = vtanh.f32 %v225_v58  ;;  %v228_v62 = vadd.f32 %v1508_v54, %v227_v61 }
 0x11a   :  { %1180 = vtanh.f32 %v236_v60 }
 0x11b   :  { %1182 = vtanh.f32 %v228_v62 }
 0x11d   :  { %v1047_v63 = vpop.f32.mrb[4].mxu0 }
 0x11e   :  { %v249_v0 = vadd.f32 %v1047_v63, %v1508_v54  ;;  %v240_v1 = vpop.f32.mrb[5].mxu0 }
 0x11f   :  { %v241_v2 = vadd.f32 %v1508_v54, %v240_v1  ;;  %v1048_v3 = vpop.f32.mrb[6].mxu0 }
 0x120   :  { %1184 = vtanh.f32 %v249_v0  ;;  %v252_v4 = vadd.f32 %v1048_v3, %v1508_v54  ;;  %v243_v5 = vpop.f32.mrb[7].mxu0 }
 0x121   :  { %1186 = vtanh.f32 %v241_v2  ;;  %v244_v6 = vadd.f32 %v1508_v54, %v243_v5 }
 0x122   :  { %v1177_v7 = vpop.eup %1176  ;;  %1188 = vtanh.f32 %v252_v4 }
 0x123   :  { %v1179_v8 = vpop.eup %1178  ;;  %1190 = vtanh.f32 %v244_v6 }
 0x124   :  { %v1181_v9 = vpop.eup %1180 }
 0x125   :  { %v1183_v10 = vpop.eup %1182  ;;  %v1051_v11 = vpop.f32.mrb[8].mxu0  ;;  %v384_v12 = vpack.c.bf16 %v1181_v9, %v1177_v7 }
 0x126   :  { %v265_v13 = vadd.f32 %v1051_v11, %v1508_v54  ;;  %v256_v14 = vpop.f32.mrb[9].mxu0  ;;  %v383_v15 = vpack.c.bf16 %v1183_v10, %v1179_v8 }
 0x127   :  { %v257_v16 = vadd.f32 %v1508_v54, %v256_v14  ;;  %v1052_v17 = vpop.f32.mrb[10].mxu0 }
 0x128   :  { %1192 = vtanh.f32 %v265_v13  ;;  %v268_v18 = vadd.f32 %v1052_v17, %v1508_v54  ;;  %v259_v19 = vpop.f32.mrb[11].mxu0  ;;  %1081 = vmatprep.mubr.msk.bf16.mxu1 %vm438_vm1, %v383_v15 }
 0x129   :  { %1194 = vtanh.f32 %v257_v16  ;;  %v260_v20 = vadd.f32 %v1508_v54, %v259_v19  ;;  %1082 = vmatmul.mubr.msk.bf16.vlgmr.msra.gmra.mrb[0].mxu1 %vm438_vm1, %v384_v12 }
 0x12a   :  { %v1185_v21 = vpop.eup %1184  ;;  %1196 = vtanh.f32 %v268_v18 }
 0x12b   :  { %v1187_v22 = vpop.eup %1186  ;;  %1198 = vtanh.f32 %v260_v20 }
 0x12c   :  { %v1189_v23 = vpop.eup %1188 }
 0x12d   :  { %v1191_v24 = vpop.eup %1190  ;;  %v1055_v25 = vpop.f32.mrb[12].mxu0  ;;  %v386_v26 = vpack.c.bf16 %v1189_v23, %v1185_v21 }
 0x12e   :  { %v281_v27 = vadd.f32 %v1055_v25, %v1508_v54  ;;  %v272_v28 = vpop.f32.mrb[13].mxu0  ;;  %v385_v29 = vpack.c.bf16 %v1191_v24, %v1187_v22 }
 0x12f   :  { %v273_v30 = vadd.f32 %v1508_v54, %v272_v28  ;;  %v1056_v31 = vpop.f32.mrb[14].mxu0 }
 0x130   :  { %1200 = vtanh.f32 %v281_v27  ;;  %v284_v32 = vadd.f32 %v1056_v31, %v1508_v54  ;;  %v275_v33 = vpop.f32.mrb[15].mxu0  ;;  %1085 = vmatprep.mubr.msk.bf16.mxu1 %vm438_vm1, %v385_v29 }
 0x131   :  { %1202 = vtanh.f32 %v273_v30  ;;  %v276_v34 = vadd.f32 %v1508_v54, %v275_v33  ;;  %1086 = vmatmul.mubr.msk.bf16.gmra.mrb[4].mxu1 %vm438_vm1, %v386_v26 }
 0x132   :  { %v1193_v35 = vpop.eup %1192  ;;  %1204 = vtanh.f32 %v284_v32 }
 0x133   :  { %v1195_v36 = vpop.eup %1194  ;;  %1206 = vtanh.f32 %v276_v34 }
 0x134   :  { %v1197_v37 = vpop.eup %1196 }
 0x135   :  { %v1199_v38 = vpop.eup %1198  ;;  %v1059_v39 = vpop.f32.mrb[16].mxu0  ;;  %v388_v40 = vpack.c.bf16 %v1197_v37, %v1193_v35 }
 0x136   :  { %v297_v41 = vadd.f32 %v1059_v39, %v1508_v54  ;;  %v288_v42 = vpop.f32.mrb[17].mxu0  ;;  %v387_v43 = vpack.c.bf16 %v1199_v38, %v1195_v36 }
 0x137   :  { %v289_v44 = vadd.f32 %v1508_v54, %v288_v42  ;;  %v1060_v45 = vpop.f32.mrb[18].mxu0 }
 0x138   :  { %1208 = vtanh.f32 %v297_v41  ;;  %v300_v46 = vadd.f32 %v1060_v45, %v1508_v54  ;;  %v291_v47 = vpop.f32.mrb[19].mxu0  ;;  %1089 = vmatprep.mubr.msk.bf16.mxu1 %vm438_vm1, %v387_v43 }
 0x139   :  { %1210 = vtanh.f32 %v289_v44  ;;  %v292_v48 = vadd.f32 %v1508_v54, %v291_v47  ;;  %1090 = vmatmul.mubr.msk.bf16.gmra.mrb[8].mxu1 %vm438_vm1, %v388_v40  ;;  %v1568_v40 = vld [vmem:[%s1733_s4] ss:$0 sm:$0xff] }
 0x13a   :  { %v1201_v49 = vpop.eup %1200  ;;  %1212 = vtanh.f32 %v300_v46 }
 0x13b   :  { %v1203_v50 = vpop.eup %1202  ;;  %1214 = vtanh.f32 %v292_v48 }
 0x13c   :  { %v1205_v51 = vpop.eup %1204 }
 0x13d   :  { %v1207_v52 = vpop.eup %1206  ;;  %v1063_v53 = vpop.f32.mrb[20].mxu0  ;;  %v390_v55 = vpack.c.bf16 %v1205_v51, %v1201_v49 }
 0x13e   :  { %v313_v56 = vadd.f32 %v1063_v53, %v1508_v54  ;;  %v304_v57 = vpop.f32.mrb[21].mxu0  ;;  %v389_v58 = vpack.c.bf16 %v1207_v52, %v1203_v50 }
 0x13f   :  { %v305_v59 = vadd.f32 %v1508_v54, %v304_v57  ;;  %v1064_v60 = vpop.f32.mrb[22].mxu0 }
 0x140   :  { %1216 = vtanh.f32 %v313_v56  ;;  %v316_v61 = vadd.f32 %v1064_v60, %v1508_v54  ;;  %1093 = vmatprep.mubr.msk.bf16.mxu1 %vm438_vm1, %v389_v58  ;;  %v307_v62 = vpop.f32.mrb[23].mxu0 }
 0x141   :  { %1218 = vtanh.f32 %v305_v59  ;;  %v308_v63 = vadd.f32 %v1508_v54, %v307_v62  ;;  %1094 = vmatmul.mubr.msk.bf16.gmra.mrb[12].mxu1 %vm438_vm1, %v390_v55 }
 0x142   :  { %v1209_v0 = vpop.eup %1208  ;;  %1220 = vtanh.f32 %v316_v61 }
 0x143   :  { %v1211_v1 = vpop.eup %1210  ;;  %1222 = vtanh.f32 %v308_v63 }
 0x144   :  { %v1213_v2 = vpop.eup %1212 }
 0x145   :  { %v1215_v3 = vpop.eup %1214  ;;  %v392_v4 = vpack.c.bf16 %v1213_v2, %v1209_v0  ;;  %v1067_v5 = vpop.f32.mrb[24].mxu0 }
 0x146   :  { %v391_v6 = vpack.c.bf16 %v1215_v3, %v1211_v1  ;;  %v329_v7 = vadd.f32 %v1067_v5, %v1508_v54  ;;  %v320_v8 = vpop.f32.mrb[25].mxu0 }
 0x147   :  { %v321_v9 = vadd.f32 %v1508_v54, %v320_v8  ;;  %v1068_v10 = vpop.f32.mrb[26].mxu0 }
 0x148   :  { %1097 = vmatprep.mubr.msk.bf16.mxu1 %vm438_vm1, %v391_v6  ;;  %1224 = vtanh.f32 %v329_v7  ;;  %v332_v11 = vadd.f32 %v1068_v10, %v1508_v54  ;;  %v323_v12 = vpop.f32.mrb[27].mxu0 }
 0x149   :  { %1098 = vmatmul.mubr.msk.bf16.gmra.mrb[16].mxu1 %vm438_vm1, %v392_v4  ;;  %1226 = vtanh.f32 %v321_v9  ;;  %v324_v13 = vadd.f32 %v1508_v54, %v323_v12 }
 0x14a   :  { %v1217_v14 = vpop.eup %1216  ;;  %1228 = vtanh.f32 %v332_v11 }
 0x14b   :  { %v1219_v15 = vpop.eup %1218  ;;  %1230 = vtanh.f32 %v324_v13 }
 0x14c   :  { %v1221_v16 = vpop.eup %1220 }
 0x14d   :  { %v1223_v17 = vpop.eup %1222  ;;  %v394_v18 = vpack.c.bf16 %v1221_v16, %v1217_v14  ;;  %v1071_v19 = vpop.f32.mrb[28].mxu0 }
 0x14e   :  { %v393_v20 = vpack.c.bf16 %v1223_v17, %v1219_v15  ;;  %v345_v21 = vadd.f32 %v1071_v19, %v1508_v54  ;;  %v336_v22 = vpop.f32.mrb[29].mxu0 }
 0x14f   :  { %v337_v23 = vadd.f32 %v1508_v54, %v336_v22  ;;  %v1072_v24 = vpop.f32.mrb[30].mxu0 }
 0x150   :  { %1101 = vmatprep.mubr.msk.bf16.mxu1 %vm438_vm1, %v393_v20  ;;  %1232 = vtanh.f32 %v345_v21  ;;  %v348_v25 = vadd.f32 %v1072_v24, %v1508_v54  ;;  %v339_v26 = vpop.f32.mrb[31].mxu0 }
 0x151   :  { %1102 = vmatmul.mubr.msk.bf16.gmra.mrb[20].mxu1 %vm438_vm1, %v394_v18  ;;  %1234 = vtanh.f32 %v337_v23  ;;  %v340_v27 = vadd.f32 %v1508_v54, %v339_v26  ;;  %v1561_v54 = vld [vmem:[%s1734_s5] sm:$0x1] }
 0x152   :  { %v1225_v28 = vpop.eup %1224  ;;  %1236 = vtanh.f32 %v348_v25  ;;  %1035 = vmatprep.mubr.msk.f32.mxu0 %vm438_vm1, %v1561_v54 }
 0x153   :  { %v1227_v29 = vpop.eup %1226  ;;  %1238 = vtanh.f32 %v340_v27 }
 0x154   :  { %v1229_v30 = vpop.eup %1228 }
 0x155   :  { %v1231_v31 = vpop.eup %1230  ;;  %v396_v32 = vpack.c.bf16 %v1229_v30, %v1225_v28 }
 0x156   :  { %v395_v33 = vpack.c.bf16 %v1231_v31, %v1227_v29 }
 0x158   :  { %1105 = vmatprep.mubr.msk.bf16.mxu1 %vm438_vm1, %v395_v33 }
 0x159   :  { %1106 = vmatmul.mubr.msk.bf16.gmra.mrb[24].mxu1 %vm438_vm1, %v396_v32 }
 0x15a   :  { %v1233_v34 = vpop.eup %1232 }
 0x15b   :  { %v1235_v35 = vpop.eup %1234 }
 0x15c   :  { %v1237_v36 = vpop.eup %1236 }
 0x15d   :  { %v1239_v37 = vpop.eup %1238  ;;  %v398_v38 = vpack.c.bf16 %v1237_v36, %v1233_v34 }
 0x15e   :  { %v397_v39 = vpack.c.bf16 %v1239_v37, %v1235_v35 }
 0x160   :  { %1109 = vmatprep.mubr.msk.bf16.mxu1 %vm438_vm1, %v397_v39 }
 0x161   :  { %1110 = vmatmul.mubr.msk.bf16.gmra.mrb[28].mxu1 %vm438_vm1, %v398_v38 }
 0x1fc   :  { %v1083_v41 = vpop.f32.mrb[0].mxu1 }
 0x1fd   :  { %v530_v42 = vadd.f32 %v1083_v41, %v1568_v40  ;;  %v521_v43 = vpop.f32.mrb[1].mxu1 }
 0x1fe   :  { %v522_v44 = vadd.f32 %v1568_v40, %v521_v43  ;;  %v1084_v45 = vpop.f32.mrb[2].mxu1 }
 0x1ff   :  { %1240 = vtanh.f32 %v530_v42  ;;  %v533_v46 = vadd.f32 %v1084_v45, %v1568_v40  ;;  %v524_v47 = vpop.f32.mrb[3].mxu1 }
 0x200   :  { %1242 = vtanh.f32 %v522_v44  ;;  %v525_v48 = vadd.f32 %v1568_v40, %v524_v47 }
 0x201   :  { %1244 = vtanh.f32 %v533_v46 }
 0x202   :  { %1246 = vtanh.f32 %v525_v48 }
 0x204   :  { %v1087_v49 = vpop.f32.mrb[4].mxu1 }
 0x205   :  { %v546_v50 = vadd.f32 %v1087_v49, %v1568_v40  ;;  %v537_v51 = vpop.f32.mrb[5].mxu1 }
 0x206   :  { %v538_v52 = vadd.f32 %v1568_v40, %v537_v51  ;;  %v1088_v53 = vpop.f32.mrb[6].mxu1 }
 0x207   :  { %1248 = vtanh.f32 %v546_v50  ;;  %v549_v55 = vadd.f32 %v1088_v53, %v1568_v40  ;;  %v540_v56 = vpop.f32.mrb[7].mxu1 }
 0x208   :  { %1250 = vtanh.f32 %v538_v52  ;;  %v541_v57 = vadd.f32 %v1568_v40, %v540_v56 }
 0x209   :  { %v1578_v58 = vpop.eup %1240  ;;  %1252 = vtanh.f32 %v549_v55 }
 0x20a   :  { %v1580_v59 = vpop.eup %1242  ;;  %1254 = vtanh.f32 %v541_v57 }
 0x20b   :  { %v1582_v60 = vpop.eup %1244 }
 0x20c   :  { %v1584_v61 = vpop.eup %1246  ;;  %v1091_v62 = vpop.f32.mrb[8].mxu1  ;;  %v1122_v63 = vpack.c.bf16 %v1582_v60, %v1578_v58 }
 0x20d   :  { %v562_v0 = vadd.f32 %v1091_v62, %v1568_v40  ;;  %v553_v1 = vpop.f32.mrb[9].mxu1  ;;  %v1116_v2 = vpack.c.bf16 %v1584_v61, %v1580_v59 }
 0x20e   :  { %v554_v3 = vadd.f32 %v1568_v40, %v553_v1  ;;  %v1092_v4 = vpop.f32.mrb[10].mxu1 }
 0x20f   :  { %1256 = vtanh.f32 %v562_v0  ;;  %v565_v5 = vadd.f32 %v1092_v4, %v1568_v40  ;;  %v556_v6 = vpop.f32.mrb[11].mxu1 }
 0x210   :  { %1258 = vtanh.f32 %v554_v3  ;;  %v557_v7 = vadd.f32 %v1568_v40, %v556_v6 }
 0x211   :  { %v1594_v8 = vpop.eup %1248  ;;  %1260 = vtanh.f32 %v565_v5 }
 0x212   :  { %v1596_v9 = vpop.eup %1250  ;;  %1262 = vtanh.f32 %v557_v7 }
 0x213   :  { %v1598_v10 = vpop.eup %1252 }
 0x214   :  { %v1600_v11 = vpop.eup %1254  ;;  %v1095_v12 = vpop.f32.mrb[12].mxu1  ;;  %v1134_v13 = vpack.c.bf16 %v1598_v10, %v1594_v8  ;;  %v1405_v8 = vmov 1966171168   ;;  %v859_v10 = vlaneseq }
 0x215   :  { %v578_v14 = vadd.f32 %v1095_v12, %v1568_v40  ;;  %v569_v15 = vpop.f32.mrb[13].mxu1  ;;  %v1128_v16 = vpack.c.bf16 %v1600_v11, %v1596_v9  ;;  %v857_v9 = vunpack.c.l.s4 %v1405_v8  ;;  %v682_v11 = vstv %s1735_s6 }
 0x216   :  { %v570_v17 = vadd.f32 %v1568_v40, %v569_v15  ;;  %v1096_v18 = vpop.f32.mrb[14].mxu1  ;;  %vm873_vm3 = vcmp.lt.s32.totalorder %v859_v10, 256 }
 0x217   :  { %1264 = vtanh.f32 %v578_v14  ;;  %v581_v19 = vadd.f32 %v1096_v18, %v1568_v40  ;;  %v572_v20 = vpop.f32.mrb[15].mxu1 }
 0x218   :  { %1266 = vtanh.f32 %v570_v17  ;;  %v573_v21 = vadd.f32 %v1568_v40, %v572_v20 }
 0x219   :  { %v1610_v22 = vpop.eup %1256  ;;  %1268 = vtanh.f32 %v581_v19 }
 0x21a   :  { %v1612_v23 = vpop.eup %1258  ;;  %1270 = vtanh.f32 %v573_v21 }
 0x21b   :  { %v1614_v24 = vpop.eup %1260 }
 0x21c   :  { %v1616_v25 = vpop.eup %1262  ;;  %v1099_v26 = vpop.f32.mrb[16].mxu1  ;;  %v1146_v27 = vpack.c.bf16 %v1614_v24, %v1610_v22 }
 0x21d   :  { %v594_v28 = vadd.f32 %v1099_v26, %v1568_v40  ;;  %v585_v29 = vpop.f32.mrb[17].mxu1  ;;  %v1140_v30 = vpack.c.bf16 %v1616_v25, %v1612_v23 }
 0x21e   :  { %v586_v31 = vadd.f32 %v1568_v40, %v585_v29  ;;  %v1100_v32 = vpop.f32.mrb[18].mxu1 }
 0x21f   :  { %1272 = vtanh.f32 %v594_v28  ;;  %v597_v33 = vadd.f32 %v1100_v32, %v1568_v40  ;;  %v588_v34 = vpop.f32.mrb[19].mxu1 }
 0x220   :  { %1274 = vtanh.f32 %v586_v31  ;;  %v589_v35 = vadd.f32 %v1568_v40, %v588_v34 }
 0x221   :  { %v1626_v36 = vpop.eup %1264  ;;  %1276 = vtanh.f32 %v597_v33 }
 0x222   :  { %v1628_v37 = vpop.eup %1266  ;;  %1278 = vtanh.f32 %v589_v35 }
 0x223   :  { %v1630_v38 = vpop.eup %1268 }
 0x224   :  { %v1632_v39 = vpop.eup %1270  ;;  %v1103_v41 = vpop.f32.mrb[20].mxu1  ;;  %v1158_v42 = vpack.c.bf16 %v1630_v38, %v1626_v36 }
 0x225   :  { %v610_v43 = vadd.f32 %v1103_v41, %v1568_v40  ;;  %v601_v44 = vpop.f32.mrb[21].mxu1  ;;  %v1152_v45 = vpack.c.bf16 %v1632_v39, %v1628_v37 }
 0x226   :  { %v602_v46 = vadd.f32 %v1568_v40, %v601_v44  ;;  %v1104_v47 = vpop.f32.mrb[22].mxu1 }
 0x227   :  { %1280 = vtanh.f32 %v610_v43  ;;  %v613_v48 = vadd.f32 %v1104_v47, %v1568_v40  ;;  %v604_v49 = vpop.f32.mrb[23].mxu1 }
 0x228   :  { %1282 = vtanh.f32 %v602_v46  ;;  %v605_v50 = vadd.f32 %v1568_v40, %v604_v49 }
 0x229   :  { %v1273_v51 = vpop.eup %1272  ;;  %1284 = vtanh.f32 %v613_v48 }
 0x22a   :  { %v1275_v52 = vpop.eup %1274  ;;  %1286 = vtanh.f32 %v605_v50 }
 0x22b   :  { %v1277_v53 = vpop.eup %1276 }
 0x22c   :  { %v1279_v55 = vpop.eup %1278  ;;  %v1119_v57 = vpack.c.bf16 %v1277_v53, %v1273_v51  ;;  %v1107_v62 = vpop.f32.mrb[24].mxu1 }
 0x22d   :  { %v1113_v0 = vpack.c.bf16 %v1279_v55, %v1275_v52  ;;  %v626_v1 = vadd.f32 %v1107_v62, %v1568_v40  ;;  %v617_v3 = vpop.f32.mrb[25].mxu1 }
 0x22e   :  { %v618_v4 = vadd.f32 %v1568_v40, %v617_v3  ;;  %v1108_v5 = vpop.f32.mrb[26].mxu1 }
 0x22f   :  { %1115 = vmatprep.subr.msk.bf16.mxu0 %vm1644_vm2, %v1113_v0  ;;  %1288 = vtanh.f32 %v626_v1  ;;  %v629_v6 = vadd.f32 %v1108_v5, %v1568_v40  ;;  %v620_v7 = vpop.f32.mrb[27].mxu1 }
 0x230   :  { %1118 = vmatpush3.bf16.xpose.msk.msra.mxu0 %vm1644_vm2, %v1116_v2  ;;  %1290 = vtanh.f32 %v618_v4  ;;  %v621_v12 = vadd.f32 %v1568_v40, %v620_v7 }
 0x231   :  { %v1281_v14 = vpop.eup %1280  ;;  %1121 = vmatprep.subr.msk.bf16.mxu0 %vm1644_vm2, %v1119_v57  ;;  %1292 = vtanh.f32 %v629_v6 }
 0x232   :  { %v1283_v15 = vpop.eup %1282  ;;  %1294 = vtanh.f32 %v621_v12 }
 0x233   :  { %v1285_v17 = vpop.eup %1284 }
 0x234   :  { %v1287_v18 = vpop.eup %1286  ;;  %v1131_v19 = vpack.c.bf16 %v1285_v17, %v1281_v14  ;;  %v1111_v20 = vpop.f32.mrb[28].mxu1 }
 0x235   :  { %v1125_v21 = vpack.c.bf16 %v1287_v18, %v1283_v15  ;;  %v642_v59 = vadd.f32 %v1111_v20, %v1568_v40  ;;  %v633_v61 = vpop.f32.mrb[29].mxu1 }
 0x236   :  { %v634_v2 = vadd.f32 %v1568_v40, %v633_v61  ;;  %v1112_v26 = vpop.f32.mrb[30].mxu1 }
 0x237   :  { %1296 = vtanh.f32 %v642_v59  ;;  %v645_v28 = vadd.f32 %v1112_v26, %v1568_v40  ;;  %v636_v29 = vpop.f32.mrb[31].mxu1 }
 0x238   :  { %1124 = vmatpush3.bf16.xpose.msk.msra.mxu0 %vm1644_vm2, %v1122_v63  ;;  %1298 = vtanh.f32 %v634_v2  ;;  %v637_v31 = vadd.f32 %v1568_v40, %v636_v29 }
 0x239   :  { %v1289_v32 = vpop.eup %1288  ;;  %1127 = vmatprep.subr.msk.bf16.mxu0 %vm1644_vm2, %v1125_v21  ;;  %1300 = vtanh.f32 %v645_v28 }
 0x23a   :  { %v1291_v33 = vpop.eup %1290  ;;  %1302 = vtanh.f32 %v637_v31 }
 0x23b   :  { %v1293_v34 = vpop.eup %1292 }
 0x23c   :  { %v1295_v35 = vpop.eup %1294  ;;  %v1143_v41 = vpack.c.bf16 %v1293_v34, %v1289_v32 }
 0x23d   :  { %v1137_v43 = vpack.c.bf16 %v1295_v35, %v1291_v33 }
 0x240   :  { %1130 = vmatpush3.bf16.xpose.msk.msra.mxu0 %vm1644_vm2, %v1128_v16  ;;  %v860_v16 = vshrl.u32 %v859_v10, 7 }
 0x241   :  { %v1297_v58 = vpop.eup %1296  ;;  %1133 = vmatprep.subr.msk.bf16.mxu0 %vm1644_vm2, %v1131_v19 }
 0x242   :  { %v1299_v40 = vpop.eup %1298 }
 0x243   :  { %v1301_v60 = vpop.eup %1300 }
 0x244   :  { %v1303_v63 = vpop.eup %1302  ;;  %v1155_v44 = vpack.c.bf16 %v1301_v60, %v1297_v58 }
 0x245   :  { %v1149_v46 = vpack.c.bf16 %v1303_v63, %v1299_v40 }
 0x248   :  { %1136 = vmatpush3.bf16.xpose.msk.msra.mxu0 %vm1644_vm2, %v1134_v13  ;;  %v858_v13 = vunpack.c.0.s8 %v857_v9 }
 0x249   :  { %1139 = vmatprep.subr.msk.bf16.mxu0 %vm1644_vm2, %v1137_v43 }
 0x250   :  { %1142 = vmatpush3.bf16.xpose.msk.msra.mxu0 %vm1644_vm2, %v1140_v30 }
 0x251   :  { %1145 = vmatprep.subr.msk.bf16.mxu0 %vm1644_vm2, %v1143_v41 }
 0x258   :  { %1148 = vmatpush3.bf16.xpose.msk.msra.mxu0 %vm1644_vm2, %v1146_v27  ;;  %v861_v27 = vsub.s32 %v858_v13, %v860_v16 }
 0x259   :  { %1151 = vmatprep.subr.msk.bf16.mxu0 %vm1644_vm2, %v1149_v46 }
 0x260   :  { %1154 = vmatpush3.bf16.xpose.msk.msra.mxu0 %vm1644_vm2, %v1152_v45 }
 0x261   :  { %1157 = vmatprep.subr.msk.bf16.mxu0 %vm1644_vm2, %v1155_v44 }
 0x268   :  { %1160 = vmatpush3.bf16.xpose.msk.msra.mxu0 %vm1644_vm2, %v1158_v42 }
 0x26f   :  { %1036 = vmatmul.mubr.msk.f32.vlgmr.msra.gmra.mrb[32].mxu0 %vm438_vm1, %v1561_v54 }
 0x342   :  { %v848_v22 = vpop.f32.mrb[32].mxu0 }
 0x343   :  { %v849_v23 = vadd.f32 %v848_v22, %v682_v11  ;;  %v850_v24 = vpop.f32.mrb[33].mxu0 }
 0x344   :  { %v851_v25 = vadd.f32 %v850_v24, %v682_v11 }
 0x346   :  { %v855_v30 = vcombine.low %v849_v23, %v851_v25 }
 0x348   :  { %v862_v36 = vrot.slane %v855_v30, %v861_v27 }
 0x34a   :  { %v869_v54 = vrot.slane %v862_v36, %v861_v27 }
 0x34c   :  { %875 = vst.msk [vmem:[#allocation9] sm:$0x3] %vm873_vm3, %v869_v54 }
 0x34d   :  { %1381 = shalt.err (!%p1378_p0)
}
 0x34e   :  { %s1382_s1 = scalar_lea.hbm %s1736_s7, 32 }
 0x34f   :  { %p1383_p1 = scmp.ne.s32.totalorder %s1736_s7, %s1382_s1  ;;  %p1386_p2 = scmp.lt.u32.totalorder %s1382_s1, %s1736_s7 }
 0x351   :  { %p1388_p3 = pnand %p1386_p2, %p1383_p1 }
 0x353   :  { %1391 = shalt.err (!%p1388_p3)
}
 0x354   :  { %885 = dma.vmem_to_hbm [thread:$0]  %s883_s22, 32, %s1736_s7, [#allocation5]  }
 0x355   :  { %1396 = dma.done.wait [#allocation5], 32  }
 0x356   :  { %1397 = vsyncadd [#allocation5], 4294967264 }
 0x357   :  { %889 = vsyncpa [#allocation4], 1 }
 0x358   :  { %890 = vsyncpa [#allocation7], 1 }
 0x359   :  { %891 = vsyncpa [#allocation5], 1 }

</bundles_post_ra>
